<compile_context>
chip_gen: v7x
topology: tpu7x:2x2x1
jax: 0.10.0
libtpu: 0.0.40
codegen_flags: <defaults>
</compile_context>

<pallas_src>
import functools

import jax
import jax.numpy as jnp
from jax import lax
from jax.experimental import pallas as pl
from jax.experimental.pallas import tpu as pltpu

LANES = 128


def _grouped_ln_kernel(x_ref, w_ref, b_ref, s_ref, o_ref, *, inv_c, eps):
    """x_ref: (TR, 128) in native dtype; each 128-lane row holds 128/C whole pixels."""
    x = x_ref[...].astype(jnp.float32)                          # (TR, 128)
    s = s_ref[...]                                              # (128, 128) block-diag 0/1
    # Per-pixel (group-of-C) sums on the MXU; the result is already broadcast back to
    # every lane of its group, so everything downstream is full-width VPU + EUP.
    mu = jnp.dot(x, s, preferred_element_type=jnp.float32) * inv_c
    xc = x - mu
    var = jnp.dot(xc * xc, s, preferred_element_type=jnp.float32) * inv_c
    inv_sigma = lax.rsqrt(var + jnp.float32(eps))               # EUP
    o_ref[...] = (xc * inv_sigma * w_ref[...] + b_ref[...]).astype(o_ref.dtype)


def _rowwise_ln_kernel(x_ref, w_ref, b_ref, o_ref, *, inv_c, eps):
    """Fallback: x_ref is (TR, C) with the normalized axis on lanes (XLU reduce)."""
    x = x_ref[...].astype(jnp.float32)
    mu = jnp.sum(x, axis=-1, keepdims=True) * inv_c
    xc = x - mu
    var = jnp.sum(xc * xc, axis=-1, keepdims=True) * inv_c
    inv_sigma = lax.rsqrt(var + jnp.float32(eps))
    o_ref[...] = (xc * inv_sigma * w_ref[...] + b_ref[...]).astype(o_ref.dtype)


def _pick_row_tile(rows, lane_width, itemsize, budget_bytes=1 << 20):
    """~budget_bytes per input block, multiple of 8 sublanes, >=2 grid steps when the
    row count allows (v7x megacore sharding); full-extent block only for tiny inputs."""
    tr = max(8, (budget_bytes // max(1, lane_width * itemsize)) // 8 * 8)
    if rows >= 16:
        half = ((rows + 1) // 2 + 7) // 8 * 8    # cdiv(rows,2) rounded up to mult of 8
        tr = min(tr, half)
    if tr >= rows:
        return rows                               # block dim == array dim (always legal)
    return tr


@functools.partial(jax.jit, static_argnames=("eps",))
def withbias_layernorm(x, weight, bias, *, eps=1e-5):
    """LayerNorm over the last axis of x (biased variance) with weight & bias."""
    orig_shape = x.shape
    out_dtype = x.dtype
    c = orig_shape[-1]
    n = x.size // c
    itemsize = jnp.dtype(x.dtype).itemsize
    compiler_params = pltpu.CompilerParams(dimension_semantics=("parallel",))

    if LANES % c == 0:
        # Lane-group path: reinterpret the contiguous buffer as (rows, 128).
        total = n * c
        pad = (-total) % LANES
        flat = x.reshape(total)
        if pad:
            flat = jnp.pad(flat, (0, pad))
        rows = (total + pad) // LANES
        x2 = flat.reshape(rows, LANES)

        g = LANES // c
        w_row = jnp.tile(weight.astype(jnp.float32), g).reshape(1, LANES)
        b_row = jnp.tile(bias.astype(jnp.float32), g).reshape(1, LANES)
        grp = jnp.arange(LANES, dtype=jnp.int32) // c
        s_mat = (grp[:, None] == grp[None, :]).astype(jnp.float32)      # (128, 128)

        tr = _pick_row_tile(rows, LANES, itemsize)
        grid = (pl.cdiv(rows, tr),)

        out = pl.pallas_call(
            functools.partial(_grouped_ln_kernel, inv_c=1.0 / c, eps=eps),
            out_shape=jax.ShapeDtypeStruct((rows, LANES), out_dtype),
            grid_spec=pltpu.PrefetchScalarGridSpec(
                num_scalar_prefetch=0,
                grid=grid,
                in_specs=[
                    pl.BlockSpec((tr, LANES), lambda i: (i, 0)),        # x slab
                    pl.BlockSpec((1, LANES), lambda i: (0, 0)),         # weight row
                    pl.BlockSpec((1, LANES), lambda i: (0, 0)),         # bias row
                    pl.BlockSpec((LANES, LANES), lambda i: (0, 0)),     # group-sum const
                ],
                out_specs=pl.BlockSpec((tr, LANES), lambda i: (i, 0)),
            ),
            compiler_params=compiler_params,
        )(x2, w_row, b_row, s_mat)

        out_flat = out.reshape(rows * LANES)
        if pad:
            out_flat = out_flat[:total]
        return out_flat.reshape(orig_shape)

    # Fallback: C does not divide 128 -> keep the native (rows, C) layout.
    x2 = x.reshape(n, c)
    w_row = weight.astype(jnp.float32).reshape(1, c)
    b_row = bias.astype(jnp.float32).reshape(1, c)
    tr = _pick_row_tile(n, c, itemsize)
    grid = (pl.cdiv(n, tr),)

    out = pl.pallas_call(
        functools.partial(_rowwise_ln_kernel, inv_c=1.0 / c, eps=eps),
        out_shape=jax.ShapeDtypeStruct((n, c), out_dtype),
        grid_spec=pltpu.PrefetchScalarGridSpec(
            num_scalar_prefetch=0,
            grid=grid,
            in_specs=[
                pl.BlockSpec((tr, c), lambda i: (i, 0)),
                pl.BlockSpec((1, c), lambda i: (0, 0)),
                pl.BlockSpec((1, c), lambda i: (0, 0)),
            ],
            out_specs=pl.BlockSpec((tr, c), lambda i: (i, 0)),
        ),
        compiler_params=compiler_params,
    )(x2, w_row, b_row)
    return out.reshape(orig_shape)


def reference(x, weight, bias, eps=1e-5):
    """Pure-JAX reference matching the PyTorch WithBias_LayerNorm forward."""
    mu = jnp.mean(x, axis=-1, keepdims=True)
    var = jnp.mean((x - mu) ** 2, axis=-1, keepdims=True)      # unbiased=False
    return (x - mu) / jnp.sqrt(var + eps) * weight + bias


if __name__ == "__main__":
    # Restormer applies this LN over the channel axis: x rearranged to (B, H, W, C).
    B, H, W, C = 2, 16, 16, 4

    key = jax.random.PRNGKey(0)
    kx, kw, kb = jax.random.split(key, 3)

    x = jax.random.normal(kx, (B, H, W, C), jnp.float32)
    weight = 1.0 + 0.1 * jax.random.normal(kw, (C,), jnp.float32)
    bias = 0.1 * jax.random.normal(kb, (C,), jnp.float32)

    out = jax.block_until_ready(withbias_layernorm(x, weight, bias))
    ref = jax.block_until_ready(reference(x, weight, bias))

    assert out.shape == x.shape and out.dtype == x.dtype
    err = float(jnp.max(jnp.abs(out - ref)))
    assert err < 1e-4, f"max abs err {err}"

    print("KERNEL_OK")
</pallas_src>

<mosaic_0001>
module attributes {stable_mosaic.version = 11 : i64} {
  func.func @_grouped_ln_kernel(%arg0: i32, %arg1: memref<8x128xf32, #tpu.memory_space<vmem>>, %arg2: memref<1x128xf32, #tpu.memory_space<vmem>>, %arg3: memref<1x128xf32, #tpu.memory_space<vmem>>, %arg4: memref<128x128xf32, #tpu.memory_space<vmem>>, %arg5: memref<8x128xf32, #tpu.memory_space<vmem>>) attributes {dimension_semantics = [#tpu.dimension_semantics<parallel>], iteration_bounds = array<i64: 2>, scalar_prefetch = 0 : i64, scratch_operands = 0 : i64, tpu.core_type = #tpu.core_type<tc>, window_params = [{transform_indices = @transform_0, window_bounds = array<i64: 8, 128>}, {pipeline_mode = #tpu.pipeline_mode<synchronous>, transform_indices = @transform_1, window_bounds = array<i64: 1, 128>}, {pipeline_mode = #tpu.pipeline_mode<synchronous>, transform_indices = @transform_2, window_bounds = array<i64: 1, 128>}, {pipeline_mode = #tpu.pipeline_mode<synchronous>, transform_indices = @transform_3, window_bounds = array<i64: 128, 128>}, {transform_indices = @transform_4, window_bounds = array<i64: 8, 128>}]} {
    %c0 = arith.constant 0 : index
    %c0_0 = arith.constant 0 : index
    %0 = vector.load %arg1[%c0, %c0_0] : memref<8x128xf32, #tpu.memory_space<vmem>>, vector<8x128xf32>
    %c0_1 = arith.constant 0 : index
    %c0_2 = arith.constant 0 : index
    %1 = vector.load %arg4[%c0_1, %c0_2] : memref<128x128xf32, #tpu.memory_space<vmem>>, vector<128x128xf32>
    %cst = arith.constant dense<0.000000e+00> : vector<8x128xf32>
    %2 = tpu.matmul %0, %1, %cst {dimension_numbers = #tpu.dot_dimension_numbers<[1], [0], [0], [1], [0, 0, 1, 1], [], []>} : vector<8x128xf32>, vector<128x128xf32>, vector<8x128xf32> -> vector<8x128xf32>
    %cst_3 = arith.constant 2.500000e-01 : f32
    %3 = vector.broadcast %cst_3 : f32 to vector<8x128xf32>
    %4 = arith.mulf %2, %3 : vector<8x128xf32>
    %5 = arith.subf %0, %4 : vector<8x128xf32>
    %6 = arith.mulf %5, %5 : vector<8x128xf32>
    %cst_4 = arith.constant dense<0.000000e+00> : vector<8x128xf32>
    %7 = tpu.matmul %6, %1, %cst_4 {dimension_numbers = #tpu.dot_dimension_numbers<[1], [0], [0], [1], [0, 0, 1, 1], [], []>} : vector<8x128xf32>, vector<128x128xf32>, vector<8x128xf32> -> vector<8x128xf32>
    %cst_5 = arith.constant 2.500000e-01 : f32
    %8 = vector.broadcast %cst_5 : f32 to vector<8x128xf32>
    %9 = arith.mulf %7, %8 : vector<8x128xf32>
    %cst_6 = arith.constant 9.99999974E-6 : f32
    %10 = vector.broadcast %cst_6 : f32 to vector<8x128xf32>
    %11 = arith.addf %9, %10 : vector<8x128xf32>
    %12 = math.rsqrt %11 : vector<8x128xf32>
    %13 = arith.mulf %5, %12 : vector<8x128xf32>
    %c0_7 = arith.constant 0 : index
    %c0_8 = arith.constant 0 : index
    %14 = vector.load %arg2[%c0_7, %c0_8] : memref<1x128xf32, #tpu.memory_space<vmem>>, vector<1x128xf32>
    %15 = vector.broadcast %14 : vector<1x128xf32> to vector<8x128xf32>
    %16 = arith.mulf %13, %15 : vector<8x128xf32>
    %c0_9 = arith.constant 0 : index
    %c0_10 = arith.constant 0 : index
    %17 = vector.load %arg3[%c0_9, %c0_10] : memref<1x128xf32, #tpu.memory_space<vmem>>, vector<1x128xf32>
    %18 = vector.broadcast %17 : vector<1x128xf32> to vector<8x128xf32>
    %19 = arith.addf %16, %18 : vector<8x128xf32>
    %c0_11 = arith.constant 0 : index
    %c0_12 = arith.constant 0 : index
    %20 = vector.load %arg5[%c0_11, %c0_12] : memref<8x128xf32, #tpu.memory_space<vmem>>, vector<8x128xf32>
    tpu.vector_store %arg5[%c0_11, %c0_12], %19 {strides = array<i32>} : memref<8x128xf32, #tpu.memory_space<vmem>>, vector<8x128xf32>,
    return
  }
  func.func @transform_0(%arg0: i32) -> (i32, i32) {
    %c0_i32 = arith.constant 0 : i32
    %c0_i32_0 = arith.constant 0 : i32
    return %arg0, %c0_i32 : i32, i32
  }
  func.func @transform_1(%arg0: i32) -> (i32, i32) {
    %c0_i32 = arith.constant 0 : i32
    %c0_i32_0 = arith.constant 0 : i32
    %c0_i32_1 = arith.constant 0 : i32
    return %c0_i32, %c0_i32_0 : i32, i32
  }
  func.func @transform_2(%arg0: i32) -> (i32, i32) {
    %c0_i32 = arith.constant 0 : i32
    %c0_i32_0 = arith.constant 0 : i32
    %c0_i32_1 = arith.constant 0 : i32
    return %c0_i32, %c0_i32_0 : i32, i32
  }
  func.func @transform_3(%arg0: i32) -> (i32, i32) {
    %c0_i32 = arith.constant 0 : i32
    %c0_i32_0 = arith.constant 0 : i32
    %c0_i32_1 = arith.constant 0 : i32
    return %c0_i32, %c0_i32_0 : i32, i32
  }
  func.func @transform_4(%arg0: i32) -> (i32, i32) {
    %c0_i32 = arith.constant 0 : i32
    %c0_i32_0 = arith.constant 0 : i32
    return %arg0, %c0_i32 : i32, i32
  }
}

</mosaic_0001>

<bundles_post_ra>
// kernel: tile.13
= control target key start
LH: loop header
LB: loop body
LE: loop exit
PB: predicated region body
PF: predicated region fallthrough
CT: control target
= control target key end

     0   :  { %s40_s0 = inlined_call_operand.vmem [shape: f32[4], index: 0, kind: input, shape index: {}]   ;;  %s41_s1 = inlined_call_operand.vmem [shape: f32[32,4], index: 1, kind: output, shape index: {}]  }
   0x1   :  { %v4_v0 = vld [vmem:[%s40_s0] ss:$0 sm:$0xff] }
   0x2   :  { %5 = vst [vmem:[%s41_s1] sm:$0xff] %v4_v0  ;;  %12 = vst [vmem:[%s41_s1 + $0x8] sm:$0xff] %v4_v0 }
   0x3   :  { %13 = vst [vmem:[%s41_s1 + $0x10] sm:$0xff] %v4_v0  ;;  %14 = vst [vmem:[%s41_s1 + $0x18] sm:$0xff] %v4_v0 }

// kernel: tile.14
= control target key start
LH: loop header
LB: loop body
LE: loop exit
PB: predicated region body
PF: predicated region fallthrough
CT: control target
= control target key end

     0   :  { %s259_s10 = smov 124   ;;  %s260_s11 = smov 116   ;;  %vm3_vm0 = vcmask 31744   ;;  %vm9_vm1 = vcmask 1048544   ;;  %vm15_vm2 = vcmask 1015744   ;;  %vm21_vm3 = vcmask 982944   ;;  %s399_s0 = inlined_call_operand.vmem [shape: f32[32,4], index: 0, kind: input, shape index: {}]   ;;  %s400_s1 = inlined_call_operand.vmem [shape: f32[1,128], index: 1, kind: output, shape index: {}]  }
   0x1   :  { %v197_v0 = vld [vmem:[%s399_s0 + $0x1f] sm:$0x1]   ;;  %v199_v1 = vld [vmem:[%s399_s0 + $0x1d] sm:$0x1]   ;;  %v198_v2 = vld [vmem:[%s399_s0 + $0x1e] sm:$0x1]  }
   0x2   :  { %7 = vrot.lane.b32.xlu0 %v197_v0, %s259_s10  ;;  %19 = vrot.lane.b32.xlu1 %v199_v1, %s260_s11  ;;  %v200_v3 = vld [vmem:[%s399_s0 + $0x1c] sm:$0x1]   ;;  %s261_s16 = smov 120   ;;  %s262_s17 = smov 112   ;;  %v201_v4 = vld [vmem:[%s399_s0 + $0x1b] sm:$0x1]  }
   0x3   :  { %v202_v5 = vld [vmem:[%s399_s0 + $0x1a] sm:$0x1]   ;;  %s263_s22 = smov 108   ;;  %s264_s23 = smov 104   ;;  %v203_v6 = vld [vmem:[%s399_s0 + $0x19] sm:$0x1]  }
   0x4   :  { %v204_v7 = vld [vmem:[%s399_s0 + $0x18] sm:$0x1]   ;;  %s265_s28 = smov 100   ;;  %s266_s29 = smov 96   ;;  %v205_v8 = vld [vmem:[%s399_s0 + $0x17] sm:$0x1]  }
   0x5   :  { %v206_v9 = vld [vmem:[%s399_s0 + $0x16] sm:$0x1]   ;;  %v2_v10 = vld [vmem:[%s399_s0] sm:$0x1]   ;;  %s267_s7 = smov 92   ;;  %s268_s8 = smov 88  }
   0x6   :  { %13 = vrot.lane.b32.xlu0 %v198_v2, %s261_s16  ;;  %25 = vrot.lane.b32.xlu1 %v200_v3, %s262_s17  ;;  %4 = vst.msk [vmem:[#allocation0] sm:$0x1] %vm3_vm0, %v2_v10   ;;  %v207_v11 = vld [vmem:[%s399_s0 + $0x15] sm:$0x1]   ;;  %v208_v12 = vld [vmem:[%s399_s0 + $0x14] sm:$0x1]  }
   0x7   :  { %s269_s13 = smov 84   ;;  %s270_s14 = smov 80   ;;  %v209_v13 = vld [vmem:[%s399_s0 + $0x13] sm:$0x1]   ;;  %v210_v14 = vld [vmem:[%s399_s0 + $0x12] sm:$0x1]  }
   0x8   :  { %s271_s19 = smov 76   ;;  %s272_s20 = smov 72   ;;  %v211_v15 = vld [vmem:[%s399_s0 + $0x11] sm:$0x1]   ;;  %v212_v16 = vld [vmem:[%s399_s0 + $0x10] sm:$0x1]  }
   0x9   :  { %s273_s25 = smov 68   ;;  %s274_s26 = smov 64   ;;  %v213_v17 = vld [vmem:[%s399_s0 + $0xf] sm:$0x1]   ;;  %v214_v18 = vld [vmem:[%s399_s0 + $0xe] sm:$0x1]  }
   0xa   :  { %31 = vrot.lane.b32.xlu0 %v201_v4, %s263_s22  ;;  %37 = vrot.lane.b32.xlu1 %v202_v5, %s264_s23  ;;  %s275_s2 = smov 60   ;;  %s276_s3 = smov 56   ;;  %v215_v19 = vld [vmem:[%s399_s0 + $0xd] sm:$0x1]   ;;  %v216_v20 = vld [vmem:[%s399_s0 + $0xc] sm:$0x1]  }
   0xb   :  { %s278_s9 = smov 48   ;;  %v217_v21 = vld [vmem:[%s399_s0 + $0xb] sm:$0x1]   ;;  %v218_v22 = vld [vmem:[%s399_s0 + $0xa] sm:$0x1]   ;;  %s280_s15 = smov 40  }
   0xc   :  { %v219_v23 = vld [vmem:[%s399_s0 + $0x9] sm:$0x1]   ;;  %v220_v24 = vld [vmem:[%s399_s0 + $0x8] sm:$0x1]   ;;  %s282_s21 = smov 32   ;;  %s284_s27 = smov 24  }
   0xd   :  { %v221_v25 = vld [vmem:[%s399_s0 + $0x7] sm:$0x1]   ;;  %v222_v26 = vld [vmem:[%s399_s0 + $0x6] sm:$0x1]   ;;  %v223_v27 = vld [vmem:[%s399_s0 + $0x5] sm:$0x1]  }
   0xe   :  { %43 = vrot.lane.b32.xlu0 %v203_v6, %s265_s28  ;;  %49 = vrot.lane.b32.xlu1 %v204_v7, %s266_s29  ;;  %v224_v28 = vld [vmem:[%s399_s0 + $0x4] sm:$0x1]   ;;  %s286_s4 = smov 16   ;;  %v225_v29 = vld [vmem:[%s399_s0 + $0x3] sm:$0x1]   ;;  %s288_s10 = smov 8  }
   0xf   :  { %v226_v30 = vld [vmem:[%s399_s0 + $0x2] sm:$0x1]   ;;  %v227_v31 = vld [vmem:[%s399_s0 + $0x1] sm:$0x1]   ;;  %s289_s0 = smov 4   ;;  %vm27_vm4 = vcmask 950144  }
  0x10   :  { %vm33_vm5 = vcmask 917344   ;;  %vm39_vm6 = vcmask 884544   ;;  %vm45_vm7 = vcmask 851744   ;;  %vm51_vm8 = vcmask 818944  }
  0x11   :  { %vm57_vm9 = vcmask 786144   ;;  %vm63_vm10 = vcmask 753344   ;;  %vm69_vm11 = vcmask 720544   ;;  %vm75_vm12 = vcmask 687744  }
  0x12   :  { %55 = vrot.lane.b32.xlu0 %v205_v8, %s267_s7  ;;  %61 = vrot.lane.b32.xlu1 %v206_v9, %s268_s8  ;;  %s277_s8 = smov 52   ;;  %vm81_vm13 = vcmask 654944   ;;  %vm87_vm14 = vcmask 622144   ;;  %vm93_vm15 = vcmask 589344   ;;  %vm99_vm0 = vcmask 556544  }
  0x16   :  { %67 = vrot.lane.b32.xlu0 %v207_v11, %s269_s13  ;;  %73 = vrot.lane.b32.xlu1 %v208_v12, %s270_s14  ;;  %s279_s14 = smov 44  }
  0x1a   :  { %79 = vrot.lane.b32.xlu0 %v209_v13, %s271_s19  ;;  %85 = vrot.lane.b32.xlu1 %v210_v14, %s272_s20  ;;  %s281_s20 = smov 36  }
  0x1e   :  { %91 = vrot.lane.b32.xlu0 %v211_v15, %s273_s25  ;;  %97 = vrot.lane.b32.xlu1 %v212_v16, %s274_s26  ;;  %s283_s26 = smov 28  }
  0x22   :  { %103 = vrot.lane.b32.xlu0 %v213_v17, %s275_s2  ;;  %109 = vrot.lane.b32.xlu1 %v214_v18, %s276_s3  ;;  %s285_s3 = smov 20  }
  0x26   :  { %115 = vrot.lane.b32.xlu0 %v215_v19, %s277_s8  ;;  %121 = vrot.lane.b32.xlu1 %v216_v20, %s278_s9  ;;  %s287_s9 = smov 12  }
  0x2a   :  { %127 = vrot.lane.b32.xlu0 %v217_v21, %s279_s14  ;;  %133 = vrot.lane.b32.xlu1 %v218_v22, %s280_s15 }
  0x2e   :  { %139 = vrot.lane.b32.xlu0 %v219_v23, %s281_s20  ;;  %145 = vrot.lane.b32.xlu1 %v220_v24, %s282_s21 }
  0x32   :  { %151 = vrot.lane.b32.xlu0 %v221_v25, %s283_s26  ;;  %157 = vrot.lane.b32.xlu1 %v222_v26, %s284_s27 }
  0x36   :  { %163 = vrot.lane.b32.xlu0 %v223_v27, %s285_s3  ;;  %169 = vrot.lane.b32.xlu1 %v224_v28, %s286_s4 }
  0x3a   :  { %175 = vrot.lane.b32.xlu0 %v225_v29, %s287_s9  ;;  %181 = vrot.lane.b32.xlu1 %v226_v30, %s288_s10 }
  0x3e   :  { %187 = vrot.lane.b32.xlu0 %v227_v31, %s289_s0 }
  0x74   :  { %v8_v32 = vpop.permute.xlu0 %7   ;;  %v20_v33 = vpop.permute.xlu1 %19  }
  0x75   :  { %10 = vst.msk [vmem:[#allocation0] sm:$0x1] %vm9_vm1, %v8_v32   ;;  %vm105_vm1 = vcmask 523744  }
  0x78   :  { %v14_v34 = vpop.permute.xlu0 %13   ;;  %v26_v35 = vpop.permute.xlu1 %25  }
  0x79   :  { %16 = vst.msk [vmem:[#allocation0] sm:$0x1] %vm15_vm2, %v14_v34   ;;  %vm111_vm2 = vcmask 490944  }
  0x7a   :  { %22 = vst.msk [vmem:[#allocation0] sm:$0x1] %vm21_vm3, %v20_v33   ;;  %vm117_vm3 = vcmask 458144  }
  0x7b   :  { %28 = vst.msk [vmem:[#allocation0] sm:$0x1] %vm27_vm4, %v26_v35   ;;  %vm123_vm4 = vcmask 425344  }
  0x7c   :  { %v32_v36 = vpop.permute.xlu0 %31   ;;  %v38_v37 = vpop.permute.xlu1 %37  }
  0x7d   :  { %34 = vst.msk [vmem:[#allocation0] sm:$0x1] %vm33_vm5, %v32_v36   ;;  %vm129_vm5 = vcmask 392544  }
  0x7e   :  { %40 = vst.msk [vmem:[#allocation0] sm:$0x1] %vm39_vm6, %v38_v37   ;;  %vm135_vm6 = vcmask 359744  }
  0x80   :  { %v44_v38 = vpop.permute.xlu0 %43   ;;  %v50_v39 = vpop.permute.xlu1 %49  }
  0x81   :  { %46 = vst.msk [vmem:[#allocation0] sm:$0x1] %vm45_vm7, %v44_v38   ;;  %vm141_vm7 = vcmask 326944  }
  0x82   :  { %52 = vst.msk [vmem:[#allocation0] sm:$0x1] %vm51_vm8, %v50_v39   ;;  %vm147_vm8 = vcmask 294144  }
  0x84   :  { %v56_v40 = vpop.permute.xlu0 %55   ;;  %v62_v41 = vpop.permute.xlu1 %61  }
  0x85   :  { %58 = vst.msk [vmem:[#allocation0] sm:$0x1] %vm57_vm9, %v56_v40   ;;  %vm153_vm9 = vcmask 261344  }
  0x86   :  { %64 = vst.msk [vmem:[#allocation0] sm:$0x1] %vm63_vm10, %v62_v41   ;;  %vm159_vm10 = vcmask 228544  }
  0x88   :  { %v68_v42 = vpop.permute.xlu0 %67   ;;  %v74_v43 = vpop.permute.xlu1 %73  }
  0x89   :  { %70 = vst.msk [vmem:[#allocation0] sm:$0x1] %vm69_vm11, %v68_v42   ;;  %vm165_vm11 = vcmask 195744  }
  0x8a   :  { %76 = vst.msk [vmem:[#allocation0] sm:$0x1] %vm75_vm12, %v74_v43   ;;  %vm171_vm12 = vcmask 162944  }
  0x8c   :  { %v80_v44 = vpop.permute.xlu0 %79   ;;  %v86_v45 = vpop.permute.xlu1 %85  }
  0x8d   :  { %82 = vst.msk [vmem:[#allocation0] sm:$0x1] %vm81_vm13, %v80_v44   ;;  %vm177_vm13 = vcmask 130144  }
  0x8e   :  { %88 = vst.msk [vmem:[#allocation0] sm:$0x1] %vm87_vm14, %v86_v45   ;;  %vm183_vm14 = vcmask 97344  }
  0x90   :  { %v92_v46 = vpop.permute.xlu0 %91   ;;  %v98_v47 = vpop.permute.xlu1 %97  }
  0x91   :  { %94 = vst.msk [vmem:[#allocation0] sm:$0x1] %vm93_vm15, %v92_v46   ;;  %vm189_vm15 = vcmask 64544  }
  0x92   :  { %100 = vst.msk [vmem:[#allocation0] sm:$0x1] %vm99_vm0, %v98_v47  }
  0x94   :  { %v104_v48 = vpop.permute.xlu0 %103   ;;  %v110_v49 = vpop.permute.xlu1 %109  }
  0x95   :  { %106 = vst.msk [vmem:[#allocation0] sm:$0x1] %vm105_vm1, %v104_v48  }
  0x96   :  { %112 = vst.msk [vmem:[#allocation0] sm:$0x1] %vm111_vm2, %v110_v49  }
  0x98   :  { %v116_v50 = vpop.permute.xlu0 %115   ;;  %v122_v51 = vpop.permute.xlu1 %121  }
  0x99   :  { %118 = vst.msk [vmem:[#allocation0] sm:$0x1] %vm117_vm3, %v116_v50  }
  0x9a   :  { %124 = vst.msk [vmem:[#allocation0] sm:$0x1] %vm123_vm4, %v122_v51  }
  0x9c   :  { %v128_v52 = vpop.permute.xlu0 %127   ;;  %v134_v53 = vpop.permute.xlu1 %133  }
  0x9d   :  { %130 = vst.msk [vmem:[#allocation0] sm:$0x1] %vm129_vm5, %v128_v52  }
  0x9e   :  { %136 = vst.msk [vmem:[#allocation0] sm:$0x1] %vm135_vm6, %v134_v53  }
  0xa0   :  { %v140_v54 = vpop.permute.xlu0 %139   ;;  %v146_v55 = vpop.permute.xlu1 %145  }
  0xa1   :  { %142 = vst.msk [vmem:[#allocation0] sm:$0x1] %vm141_vm7, %v140_v54  }
  0xa2   :  { %148 = vst.msk [vmem:[#allocation0] sm:$0x1] %vm147_vm8, %v146_v55  }
  0xa4   :  { %v152_v56 = vpop.permute.xlu0 %151   ;;  %v158_v57 = vpop.permute.xlu1 %157  }
  0xa5   :  { %154 = vst.msk [vmem:[#allocation0] sm:$0x1] %vm153_vm9, %v152_v56  }
  0xa6   :  { %160 = vst.msk [vmem:[#allocation0] sm:$0x1] %vm159_vm10, %v158_v57  }
  0xa8   :  { %v164_v58 = vpop.permute.xlu0 %163   ;;  %v170_v59 = vpop.permute.xlu1 %169  }
  0xa9   :  { %166 = vst.msk [vmem:[#allocation0] sm:$0x1] %vm165_vm11, %v164_v58  }
  0xaa   :  { %172 = vst.msk [vmem:[#allocation0] sm:$0x1] %vm171_vm12, %v170_v59  }
  0xac   :  { %v176_v60 = vpop.permute.xlu0 %175   ;;  %v182_v61 = vpop.permute.xlu1 %181  }
  0xad   :  { %178 = vst.msk [vmem:[#allocation0] sm:$0x1] %vm177_vm13, %v176_v60  }
  0xae   :  { %184 = vst.msk [vmem:[#allocation0] sm:$0x1] %vm183_vm14, %v182_v61  }
  0xb0   :  { %v188_v62 = vpop.permute.xlu0 %187  }
  0xb1   :  { %190 = vst.msk [vmem:[#allocation0] sm:$0x1] %vm189_vm15, %v188_v62  }
  0xb8   :  { %v194_v63 = vld [vmem:[#allocation0] sm:$0x1] }
  0xb9   :  { %196 = vst [vmem:[%s400_s1] sm:$0x1] %v194_v63 }

// kernel: withbias_layernorm.1
= control target key start
LH: loop header
LB: loop body
LE: loop exit
PB: predicated region body
PF: predicated region fallthrough
CT: control target
= control target key end

     0   :  { %s639_s15 = smov 0   ;;  %s717_s0 = inlined_call_operand.vmem [shape: f32[16,128], index: 0, kind: input, shape index: {}]   ;;  %s718_s1 = inlined_call_operand.vmem [shape: f32[1,128], index: 1, kind: input, shape index: {}]   ;;  %s719_s2 = inlined_call_operand.vmem [shape: f32[1,128], index: 2, kind: input, shape index: {}]   ;;  %s720_s3 = inlined_call_operand.vmem [shape: f32[128,128], index: 3, kind: input, shape index: {}]   ;;  %s721_s4 = inlined_call_operand.vmem [shape: f32[16,128], index: 4, kind: output, shape index: {}]  }
   0x1 LB: > { %s427_s16 = sadd.s32 4294967295, %s609_s15   ;;  %p431_p0 = scmp.ge.s32.totalorder %s609_s15, 1  ;;  %s609_s15 = sphi %s639_s15, %s14_s15  }
   0x2   : > { %p161_p1 = scmp.lt.s32.totalorder %s609_s15, 3 }
   0x4   : > { %p162_p2 = pnand %p431_p0, %p161_p1 }
   0x5   : > { %v194_v0 = vld [vmem:[%s720_s3] sm:$0xff] (!%p162_p2)  ;;  %v195_v1 = vld [vmem:[%s720_s3 + $0x8] sm:$0xff] (!%p162_p2)  ;;  %v196_v2 = vld [vmem:[%s720_s3 + $0x10] sm:$0xff] (!%p162_p2)  ;;  %v611_v3 = vmov (!%p162_p2), 0.0|0.0   ;;  %vm612_vm0 = vmmov (!%p162_p2), 0   ;;  %v613_v6 = vmov (!%p162_p2), 0.0  }
   0x6   : > { %165 = sbr.rel (%p162_p2) target bundleno = 491 (0x1eb), region = 36  ;;  %542 = vmatprep.subr.bf16.mxu0 (!%p162_p2), %v611_v3  ;;  %v543_v4 = vpack.c.bf16 (!%p162_p2), %v195_v1, %v194_v0  ;;  %v197_v5 = vld [vmem:[%s720_s3 + $0x18] sm:$0xff] (!%p162_p2)  ;;  %504 = vmatprep.mubr.msk.f32.mxu0 (!%p162_p2), %vm612_vm0, %v613_v6  ;;  %v198_v8 = vld [vmem:[%s720_s3 + $0x20] sm:$0xff] (!%p162_p2)  ;;  %v199_v9 = vld [vmem:[%s720_s3 + $0x28] sm:$0xff] (!%p162_p2)  ;;  %p185_p3 = scmp.lt.s32.totalorder (!%p162_p2), %s427_s16, 1 }
   0x7   : > { %566 = vmatprep.subr.bf16.mxu1 (!%p162_p2), %v611_v3  ;;  %539 = vmatprep.mubr.msk.f32.mxu1 (!%p162_p2), %vm612_vm0, %v613_v6  ;;  %v546_v7 = vpack.c.bf16 (!%p162_p2), %v197_v5, %v196_v2  ;;  %v549_v10 = vpack.c.bf16 (!%p162_p2), %v199_v9, %v198_v8  ;;  %v200_v11 = vld [vmem:[%s720_s3 + $0x30] sm:$0xff] (!%p162_p2)  ;;  %v201_v12 = vld [vmem:[%s720_s3 + $0x38] sm:$0xff] (!%p162_p2)  ;;  %v202_v14 = vld [vmem:[%s720_s3 + $0x40] sm:$0xff] (!%p162_p2) }
   0x8   : > { %544 = vmatpush3.bf16.msra.mxu0 (!%p162_p2), %v543_v4  ;;  %568 = vmatpush3.bf16.msra.mxu1 (!%p162_p2), %v543_v4  ;;  %v552_v13 = vpack.c.bf16 (!%p162_p2), %v201_v12, %v200_v11  ;;  %v203_v15 = vld [vmem:[%s720_s3 + $0x48] sm:$0xff] (!%p162_p2)  ;;  %v204_v17 = vld [vmem:[%s720_s3 + $0x50] sm:$0xff] (!%p162_p2)  ;;  %v205_v18 = vld [vmem:[%s720_s3 + $0x58] sm:$0xff] (!%p162_p2) }
   0x9   : > { %545 = vmatprep.subr.bf16.mxu0 (!%p162_p2), %v611_v3  ;;  %569 = vmatprep.subr.bf16.mxu1 (!%p162_p2), %v611_v3  ;;  %v555_v16 = vpack.c.bf16 (!%p162_p2), %v203_v15, %v202_v14  ;;  %v558_v19 = vpack.c.bf16 (!%p162_p2), %v205_v18, %v204_v17  ;;  %v206_v20 = vld [vmem:[%s720_s3 + $0x60] sm:$0xff] (!%p162_p2)  ;;  %v207_v21 = vld [vmem:[%s720_s3 + $0x68] sm:$0xff] (!%p162_p2)  ;;  %v208_v23 = vld [vmem:[%s720_s3 + $0x70] sm:$0xff] (!%p162_p2) }
   0xa   : > { %v561_v22 = vpack.c.bf16 (!%p162_p2), %v207_v21, %v206_v20  ;;  %v209_v24 = vld [vmem:[%s720_s3 + $0x78] sm:$0xff] (!%p162_p2)  ;;  %v434_v37 = vld [vmem:[%s718_s1] ss:$0 sm:$0xff] (!%p162_p2) }
   0xb   : > { %v564_v25 = vpack.c.bf16 (!%p162_p2), %v209_v24, %v208_v23  ;;  %v435_v39 = vld [vmem:[%s719_s2] ss:$0 sm:$0xff] (!%p162_p2) }
   0xc   : > { %547 = vmatpush3.bf16.msra.mxu0 (!%p162_p2), %v546_v7  ;;  %571 = vmatpush3.bf16.msra.mxu1 (!%p162_p2), %v546_v7 }
   0xd   : > { %548 = vmatprep.subr.bf16.mxu0 %v611_v3  ;;  %572 = vmatprep.subr.bf16.mxu1 %v611_v3  ;;  %s723_s16 = smov (!%p185_p3, %s427_s16), 1 }
   0xe   : > { %s432_s25 = sshll.u32 %s723_s16, 3 }
   0xf   : > { %s188_s28 = scalar_lea.vmem %s717_s0, %s432_s25  ;;  %s192_s8 = scalar_lea.vmem %s721_s4, %s432_s25 }
  0x10   : > { %550 = vmatpush3.bf16.msra.mxu0 %v549_v10  ;;  %574 = vmatpush3.bf16.msra.mxu1 %v549_v10  ;;  %v193_v26 = vld [vmem:[%s188_s28] sm:$0xff] }
  0x11   : > { %551 = vmatprep.subr.bf16.mxu0 %v611_v3  ;;  %575 = vmatprep.subr.bf16.mxu1 %v611_v3 }
  0x14   : > { %553 = vmatpush3.bf16.msra.mxu0 %v552_v13  ;;  %577 = vmatpush3.bf16.msra.mxu1 %v552_v13 }
  0x15   : > { %554 = vmatprep.subr.bf16.mxu0 %v611_v3  ;;  %578 = vmatprep.subr.bf16.mxu1 %v611_v3 }
  0x18   : > { %556 = vmatpush3.bf16.msra.mxu0 %v555_v16  ;;  %580 = vmatpush3.bf16.msra.mxu1 %v555_v16 }
  0x19   : > { %557 = vmatprep.subr.bf16.mxu0 %v611_v3  ;;  %581 = vmatprep.subr.bf16.mxu1 %v611_v3 }
  0x1c   : > { %559 = vmatpush3.bf16.msra.mxu0 %v558_v19  ;;  %583 = vmatpush3.bf16.msra.mxu1 %v558_v19 }
  0x1d   : > { %560 = vmatprep.subr.bf16.mxu0 %v611_v3  ;;  %584 = vmatprep.subr.bf16.mxu1 %v611_v3 }
  0x20   : > { %562 = vmatpush3.bf16.msra.mxu0 %v561_v22  ;;  %586 = vmatpush3.bf16.msra.mxu1 %v561_v22 }
  0x21   : > { %563 = vmatprep.subr.bf16.mxu0 %v611_v3  ;;  %587 = vmatprep.subr.bf16.mxu1 %v611_v3 }
  0x24   : > { %565 = vmatpush3.bf16.msra.mxu0 %v564_v25  ;;  %589 = vmatpush3.bf16.msra.mxu1 %v564_v25 }
  0x27   : > { %505 = vmatmul.mubr.f32.vlgmr.msra.gmra.mrb[0].mxu0 %v193_v26 }
  0xfa   : > { %v276_v27 = vpop.f32.mrb[0].mxu0 }
  0xfb   : > { %v280_v28 = vmul.f32 0.25, %v276_v27  ;;  %v506_v29 = vpop.f32.mrb[1].mxu0 }
  0xfd   : > { %v281_v30 = vsub.f32 %v193_v26, %v280_v28 }
  0xff   : > { %v282_v31 = vmul.f32 %v281_v30, %v281_v30 }
 0x101   : > { %540 = vmatmul.mubr.f32.vlgmr.msra.gmra.mrb[0].mxu1 %v282_v31 }
 0x1d4   : > { %v349_v32 = vpop.f32.mrb[0].mxu1 }
 0x1d5   : > { %v353_v33 = vmul.f32 0.25, %v349_v32  ;;  %v541_v34 = vpop.f32.mrb[1].mxu1 }
 0x1d7   : > { %v354_v35 = vadd.f32 1e-05, %v353_v33 }
 0x1d9   : > { %601 = vrsqrt.f32 %v354_v35 }
 0x1e3   : > { %v602_v36 = vpop.eup %601 }
 0x1e4   : > { %v356_v38 = vmul.f32 %v602_v36, %v281_v30 }
 0x1e6   : > { %v364_v40 = vmul.f32 %v434_v37, %v356_v38 }
 0x1e8   : > { %v372_v41 = vadd.f32 %v435_v39, %v364_v40 }
 0x1ea   : > { %373 = vst [vmem:[%s192_s8] sm:$0xff] %v372_v41 }
 0x1eb PF: > { %s14_s15 = sadd.s32 1, %s609_s15  }
 0x1ec   : > { %p11_p4 = scmp.ge.s32.totalorder %s14_s15, 4  }
 0x1ee   :  { %13 = sbr.rel (!%p11_p4) target bundleno = 1 (0x1), region = 66 }

</bundles_post_ra>
